<compile_context>
chip_gen: v5e
topology: v5e:2x2
jax: 0.10.0
libtpu: 0.0.40
codegen_flags: <defaults>
</compile_context>

<pallas_src>
import functools

import jax
import jax.numpy as jnp
from jax.experimental import pallas as pl
from jax.experimental.pallas import tpu as pltpu


def _avg_kernel(x_ref, o_ref, *, inv_t):
    # x_ref: (TB, T, TC) block; o_ref: (TB, TC) block (keepdim axis squeezed).
    x = x_ref[...].astype(jnp.float32)
    o_ref[...] = (jnp.sum(x, axis=1) * inv_t).astype(o_ref.dtype)


def _avg_pallas(x):
    """Mean over axis 1 of a (B, T, C) array, returning (B, 1, C)."""
    B, T, C = x.shape

    # ---- class-axis tiling (only when large and lane-aligned) ----------------
    if C >= 2048 and C % 128 == 0:
        TC = 1024
        while C % TC != 0:
            TC //= 2  # terminates at >=128 since C % 128 == 0
    else:
        TC = C
    num_c = C // TC

    # ---- batch-axis tiling: target ~2 MiB (f32) per input block --------------
    target_elems = (2 * 1024 * 1024) // 4
    TB = max(1, target_elems // (T * TC))
    if TB >= B:
        TB = B                      # single batch tile (block dim == full dim)
    elif TB < 8:
        TB = min(8, B)              # at least one full sublane group
    else:
        TB = (TB // 8) * 8          # multiple-of-8 sublanes

    # Pad batch so the grid divides evenly; padded rows are zeros and sliced off.
    B_pad = ((B + TB - 1) // TB) * TB
    if B_pad != B:
        x = jnp.pad(x, ((0, B_pad - B), (0, 0), (0, 0)))

    grid = (B_pad // TB, num_c)

    out2d = pl.pallas_call(
        functools.partial(_avg_kernel, inv_t=1.0 / T),
        out_shape=jax.ShapeDtypeStruct((B_pad, C), x.dtype),
        grid=grid,
        in_specs=[pl.BlockSpec((TB, T, TC), lambda i, j: (i, 0, j))],
        out_specs=pl.BlockSpec((TB, TC), lambda i, j: (i, j)),
        compiler_params=pltpu.CompilerParams(
            dimension_semantics=("parallel", "parallel"),
        ),
    )(x)

    return out2d[:B].reshape(B, 1, C)


@functools.partial(jax.jit, static_argnames=("consensus_type", "dim", "force_pallas"))
def segment_consensus(x, consensus_type="avg", dim=1, force_pallas=False):
    """Pallas implementation of SegmentConsensus.forward for (B, T, C) inputs."""
    if consensus_type == "identity":
        # Semantically a no-op in the PyTorch module; never pay an HBM round-trip.
        return x
    if consensus_type != "avg":
        raise NotImplementedError("Only avg and identity consensus implemented")

    if dim != 1:
        # TODO(synk): Pallas path only written for the segment axis (dim=1, the
        # only one TSN uses); other dims fall back to XLA's fused reduce.
        return jnp.mean(x, axis=dim, keepdims=True)

    # Tiny inputs: fixed pallas_call overhead dominates; let XLA fuse it.
    if (not force_pallas) and x.size * x.dtype.itemsize < (1 << 20):
        return jnp.mean(x, axis=1, keepdims=True)

    return _avg_pallas(x)


if __name__ == "__main__":
    key = jax.random.PRNGKey(0)
    # batch=2, num_segments=8, num_classes=32
    x = jax.random.normal(key, (2, 8, 32), dtype=jnp.float32)

    # avg consensus through the Pallas kernel
    out_avg = segment_consensus(x, consensus_type="avg", dim=1, force_pallas=True)
    jax.block_until_ready(out_avg)
    ref_avg = jnp.mean(x, axis=1, keepdims=True)
    assert out_avg.shape == (2, 1, 32), out_avg.shape
    assert jnp.allclose(out_avg, ref_avg, atol=1e-5, rtol=1e-5)

    # identity consensus (pure passthrough)
    out_id = segment_consensus(x, consensus_type="identity", dim=1)
    jax.block_until_ready(out_id)
    assert out_id.shape == x.shape
    assert jnp.allclose(out_id, x)

    # exercise batch tiling + remainder padding with a non-divisible batch
    x2 = jax.random.normal(jax.random.PRNGKey(1), (37, 8, 256), dtype=jnp.float32)
    out2 = segment_consensus(x2, consensus_type="avg", dim=1, force_pallas=True)
    jax.block_until_ready(out2)
    assert out2.shape == (37, 1, 256), out2.shape
    assert jnp.allclose(out2, jnp.mean(x2, axis=1, keepdims=True), atol=1e-5, rtol=1e-5)

    print("KERNEL_OK")
</pallas_src>

<mosaic_0001>
module attributes {stable_mosaic.version = 11 : i64} {
  func.func @_avg_kernel(%arg0: i32, %arg1: i32, %arg2: memref<2x8x32xf32, #tpu.memory_space<vmem>>, %arg3: memref<2x32xf32, #tpu.memory_space<vmem>>) attributes {dimension_semantics = [#tpu.dimension_semantics<parallel>, #tpu.dimension_semantics<parallel>], iteration_bounds = array<i64: 1, 1>, scalar_prefetch = 0 : i64, scratch_operands = 0 : i64, tpu.core_type = #tpu.core_type<tc>, window_params = [{transform_indices = @transform_0, window_bounds = array<i64: 2, 8, 32>}, {transform_indices = @transform_1, window_bounds = array<i64: 2, 32>}]} {
    %c0 = arith.constant 0 : index
    %c0_0 = arith.constant 0 : index
    %c0_1 = arith.constant 0 : index
    %0 = vector.load %arg2[%c0, %c0_0, %c0_1] : memref<2x8x32xf32, #tpu.memory_space<vmem>>, vector<2x8x32xf32>
    %cst = arith.constant dense<0.000000e+00> : vector<2x32xf32>
    %1 = vector.multi_reduction <add>, %0, %cst [1] : vector<2x8x32xf32> to vector<2x32xf32>
    %cst_2 = arith.constant 1.250000e-01 : f32
    %2 = vector.broadcast %cst_2 : f32 to vector<2x32xf32>
    %3 = arith.mulf %1, %2 : vector<2x32xf32>
    %c0_3 = arith.constant 0 : index
    %c0_4 = arith.constant 0 : index
    %4 = vector.load %arg3[%c0_3, %c0_4] : memref<2x32xf32, #tpu.memory_space<vmem>>, vector<2x32xf32>
    tpu.vector_store %arg3[%c0_3, %c0_4], %3 {strides = array<i32>} : memref<2x32xf32, #tpu.memory_space<vmem>>, vector<2x32xf32>,
    return
  }
  func.func @transform_0(%arg0: i32, %arg1: i32) -> (i32, i32, i32) {
    %c0_i32 = arith.constant 0 : i32
    %c0_i32_0 = arith.constant 0 : i32
    return %arg0, %c0_i32, %arg1 : i32, i32, i32
  }
  func.func @transform_1(%arg0: i32, %arg1: i32) -> (i32, i32) {
    %c0_i32 = arith.constant 0 : i32
    return %arg0, %arg1 : i32, i32
  }
}

</mosaic_0001>

<bundles_post_ra>
// kernel: segment_consensus.1
= control target key start
LH: loop header
LB: loop body
LE: loop exit
PB: predicated region body
PF: predicated region fallthrough
CT: control target
= control target key end

     0   :  { %6 = vsyncpa [#allocation3], 0  ;;  %s144_s0 = inlined_call_operand.hbm [shape: f32[2,8,32], index: 0, kind: input, shape index: {}]   ;;  %s145_s1 = inlined_call_operand.hbm [shape: f32[2,32], index: 1, kind: output, shape index: {}]  }
   0x1   :  { %7 = vsyncpa [#allocation4], 0  ;;  %s12_s8 = sshll.u32 %s144_s0, 4  ;;  %s124_s9 = smov [#allocation2]   ;;  %s13_s8 = int_to_ptr.hbm [resolvable:$true] %s12_s8 }
   0x2   :  { %s14_s10 = sshll.u32 %s124_s9, 4  ;;  %s125_s11 = smov 128   ;;  %s15_s10 = int_to_ptr.vmem [resolvable:$true] %s14_s10 }
   0x3   :  { %s126_s12 = smov 8  }
   0x4   :  { %20 = dma.hbm_to_vmem [thread:$0]  %s13_s8, 256, %s15_s10, [#allocation3], %s125_s11, %s125_s11, %s126_s12  }
   0x5   :  { %120 = dma.done.wait [#allocation3], 256  }
   0x6   :  { %121 = vsyncadd [#allocation3], 4294967040  ;;  %vm27_vm0 = vcmask 261120   ;;  %v25_v0 = vld [vmem:[#allocation2] sm:$0xff]  ;;  %v26_v1 = vld [vmem:[#allocation2 + $0x8] sm:$0xff]  ;;  %s127_s0 = smov [#allocation5]  }
   0x7   :  { %v28_v2 = vsel %vm27_vm0, %v25_v0, 0.0  ;;  %v35_v3 = vsel %vm27_vm0, %v26_v1, 0.0  ;;  %s56_s13 = sshll.u32 %s127_s0, 4  ;;  %s58_s16 = sshll.u32 %s145_s1, 4  ;;  %vm46_vm1 = vcmask 1041409   ;;  %vm49_vm2 = vcmask 254976   ;;  %s57_s13 = int_to_ptr.vmem [resolvable:$true] %s56_s13  ;;  %s59_s16 = int_to_ptr.hbm [resolvable:$true] %s58_s16 }
   0x8   :  { %v29_v4 = vrot.slane %v28_v2, 4  ;;  %v36_v5 = vrot.slane %v35_v3, 4 }
   0xa   :  { %v30_v6 = vadd.f32 %v29_v4, %v28_v2  ;;  %v37_v7 = vadd.f32 %v36_v5, %v35_v3 }
   0xc   :  { %v31_v8 = vrot.slane %v30_v6, 2  ;;  %v38_v9 = vrot.slane %v37_v7, 2 }
   0xe   :  { %v32_v10 = vadd.f32 %v31_v8, %v30_v6  ;;  %v39_v11 = vadd.f32 %v38_v9, %v37_v7 }
  0x10   :  { %v33_v12 = vrot.slane %v32_v10, 1  ;;  %v40_v13 = vrot.slane %v39_v11, 1 }
  0x12   :  { %v34_v14 = vadd.f32 %v33_v12, %v32_v10  ;;  %v41_v15 = vadd.f32 %v40_v13, %v39_v11 }
  0x14   :  { %v42_v16 = vmul.f32 0.125, %v34_v14  ;;  %v43_v17 = vmul.f32 0.125, %v41_v15 }
  0x16   :  { %v47_v18 = vsel %vm46_vm1, %v43_v17, %v42_v16 }
  0x17   :  { %50 = vst.msk [vmem:[#allocation5] sm:$0x3] %vm49_vm2, %v47_v18 }
  0x18   :  { %61 = dma.vmem_to_hbm [thread:$0]  %s57_s13, 32, %s59_s16, [#allocation4]  }
  0x19   :  { %122 = dma.done.wait [#allocation4], 32  }
  0x1a   :  { %123 = vsyncadd [#allocation4], 4294967264 }
  0x1b   :  { %66 = vsyncpa [#allocation3], 1 }
  0x1c   :  { %67 = vsyncpa [#allocation4], 1 }

</bundles_post_ra>
